<compile_context>
chip_gen: v7x
topology: tpu7x:2x2x1
jax: 0.10.0
libtpu: 0.0.40
codegen_flags: <defaults>
</compile_context>

<pallas_src>
import math

import jax
import jax.numpy as jnp
from jax.experimental import pallas as pl
from jax.experimental.pallas import tpu as pltpu


def _netvlad_kernel(x_ref, w_ref, b_ref, cwt_ref, out_ref):
    # x_ref:   (Bt, M, D)  input frames (compute dtype, possibly bf16)
    # w_ref:   (D, K)      linear weight, already transposed (compute dtype)
    # b_ref:   (1, K)      linear bias (f32)
    # cwt_ref: (K, D)      cluster_weights2 transposed (f32)
    # out_ref: (Bt, K, D)  lane-dense output (f32)
    Bt, M, D = x_ref.shape
    K = w_ref.shape[1]

    x = x_ref[...]                                    # (Bt, M, D)
    xf = x.reshape(Bt * M, D)                         # collapse -> fill MXU rows

    # Linear layer on the MXU, f32 accumulation.
    logits = jnp.dot(xf, w_ref[...],
                     preferred_element_type=jnp.float32) + b_ref[...]  # (Bt*M, K)

    # Softmax over clusters (f32). Normalization via approximate reciprocal
    # on the EUP (separate VLIW slot from the VPU).
    logits = logits - jnp.max(logits, axis=-1, keepdims=True)
    e = jnp.exp(logits)
    denom = jnp.sum(e, axis=-1, keepdims=True)
    act = e * pl.reciprocal(denom, approx=True)       # (Bt*M, K) f32

    act3 = act.reshape(Bt, M, K)                      # (Bt, M, K)
    a_sum = jnp.sum(act3, axis=1)                     # (Bt, K)
    a = a_sum[:, :, None] * cwt_ref[...][None, :, :]  # (Bt, K, D) f32

    # Second matmul: contract the frame axis, no explicit transpose.
    # Output is (Bt, K, D) -> D (lane dim) is dense.
    vlad = jnp.einsum('bmk,bmd->bkd',
                      act3.astype(x.dtype), x,
                      preferred_element_type=jnp.float32)  # (Bt, K, D)

    out_ref[...] = (vlad - a).astype(out_ref.dtype)


def _pick_bt(B, M, D, K, x_itemsize, budget_bytes):
    """Pick a batch tile that fits the VMEM budget and divides B exactly."""
    per_b = 2 * M * D * x_itemsize          # x block, double-buffered
    per_b += 2 * K * D * 4                  # output block, double-buffered (f32)
    per_b += 4 * M * K * 4                  # logits / exp / act intermediates
    per_b += 2 * K * D * 4                  # a / vlad intermediates
    bt = max(1, min(B, budget_bytes // max(per_b, 1)))
    while B % bt:                           # no ragged batch tiles
        bt -= 1
    return bt


def netvlad_forward(x, linear_w, linear_b, cluster_weights2, *,
                    max_frames, cluster_size, truncate=True, first=True,
                    compute_dtype=jnp.float32,
                    vmem_block_budget=12 * 1024 * 1024):
    """x: (B*max_frames, feature_size).  linear_w: (K, D) as in nn.Linear;
    linear_b: (K,);  cluster_weights2: (1, D, K).  Returns (B, D*K)."""
    x = jnp.asarray(x)
    N, F = x.shape
    assert N % max_frames == 0, "row count must be a multiple of max_frames"
    D = F // 2 if truncate else F
    K = cluster_size
    M = max_frames
    B = N // M

    # Parameter prep (tiny; done once per call).
    w = jnp.asarray(linear_w).T.astype(compute_dtype)                        # (D, K)
    b = jnp.asarray(linear_b).reshape(1, K).astype(jnp.float32)              # (1, K)
    cwt = jnp.asarray(cluster_weights2).reshape(D, K).T.astype(jnp.float32)  # (K, D)

    if x.dtype != compute_dtype:
        # bf16 compute only pays off if the input already arrives in bf16;
        # a wrapper-side cast of an f32 input adds an HBM pass.
        x = x.astype(compute_dtype)
    itemsize = jnp.dtype(compute_dtype).itemsize

    # Feature truncation: fold into the BlockSpec when the half-width is
    # lane-aligned (DMA reads only the selected D columns); otherwise slice.
    use_blockspec_trunc = truncate and (D % 128 == 0)
    if truncate and not use_blockspec_trunc:
        x = x[:, :D] if first else x[:, D:]
    x3 = x.reshape(B, M, -1)                  # (B, M, F) or (B, M, D) — free reshape
    feat_block = (0 if first else 1) if use_blockspec_trunc else 0

    Bt = _pick_bt(B, M, D, K, itemsize, vmem_block_budget)
    grid = (B // Bt,)

    # Scoped-VMEM limit: raise above the 16/32 MiB defaults but stay well
    # below v7x's 64 MiB physical (the actual need is bounded by Bt sizing).
    est_vmem = Bt * (2 * M * D * itemsize + 4 * K * D * 4 + 4 * M * K * 4) \
        + 2 * (D * K * itemsize + K * 4 + K * D * 4)
    vmem_limit = int(min(64 * 1024 * 1024, max(32 * 1024 * 1024, 4 * est_vmem)))

    cost = pl.CostEstimate(
        flops=int(4 * B * M * D * K),                 # two matmuls
        transcendentals=int(B * M * (K + 1)),         # exp + reciprocal
        bytes_accessed=int(B * M * D * itemsize       # x (only the used half)
                           + B * K * D * 4            # output
                           + D * K * itemsize + K * 4 + K * D * 4),
    )

    out = pl.pallas_call(
        _netvlad_kernel,
        out_shape=jax.ShapeDtypeStruct((B, K, D), jnp.float32),
        grid_spec=pltpu.PrefetchScalarGridSpec(
            num_scalar_prefetch=0,
            grid=grid,
            in_specs=[
                pl.BlockSpec((Bt, M, D), lambda i: (i, 0, feat_block)),
                pl.BlockSpec((D, K), lambda i: (0, 0)),
                pl.BlockSpec((1, K), lambda i: (0, 0)),
                pl.BlockSpec((K, D), lambda i: (0, 0)),
            ],
            out_specs=pl.BlockSpec((Bt, K, D), lambda i: (i, 0, 0)),
        ),
        compiler_params=pltpu.CompilerParams(
            dimension_semantics=("parallel",),
            vmem_limit_bytes=vmem_limit),
        cost_estimate=cost,
    )(x3, w, b, cwt)

    # PyTorch flattens (B, D, K) row-major (D-major); kernel emitted the
    # lane-dense (B, K, D), so swap and flatten here.
    return jnp.swapaxes(out, 1, 2).reshape(B, D * K)


def _reference(x, linear_w, linear_b, cw2, max_frames, D):
    """Pure-JAX f32 reference of the PyTorch eval forward (first=True)."""
    xt = x[:, :D].astype(jnp.float32)
    logits = xt @ jnp.asarray(linear_w, jnp.float32).T + jnp.asarray(linear_b, jnp.float32)
    act = jax.nn.softmax(logits, axis=-1)
    B = xt.shape[0] // max_frames
    act = act.reshape(B, max_frames, -1)
    xr = xt.reshape(B, max_frames, D)
    a = act.sum(axis=1, keepdims=True) * jnp.asarray(cw2, jnp.float32)   # (B, D, K)
    vlad = jnp.einsum('bmk,bmd->bdk', act, xr) - a
    return vlad.reshape(B, -1)


def _run_case(name, feature_size, max_frames, cluster_size, batch,
              compute_dtype, tol):
    D = feature_size // 2
    key = jax.random.PRNGKey(0)
    kx, kw, kb, kc = jax.random.split(key, 4)
    x = jax.random.normal(kx, (batch * max_frames, feature_size), jnp.float32)
    x = x.astype(compute_dtype)   # bf16 case: input arrives already in bf16
    linear_w = jax.random.normal(kw, (cluster_size, D), jnp.float32) / math.sqrt(D)
    linear_b = jax.random.normal(kb, (cluster_size,), jnp.float32) * 0.01
    cw2 = jax.random.normal(kc, (1, D, cluster_size), jnp.float32) / math.sqrt(D)

    vlad = netvlad_forward(x, linear_w, linear_b, cw2,
                           max_frames=max_frames, cluster_size=cluster_size,
                           truncate=True, first=True,
                           compute_dtype=compute_dtype)
    vlad = jax.block_until_ready(vlad)

    ref = _reference(x, linear_w, linear_b, cw2, max_frames, D)
    assert vlad.shape == (batch, cluster_size * D), name
    rel_err = float(jnp.max(jnp.abs(vlad - ref))
                    / jnp.maximum(jnp.max(jnp.abs(ref)), 1e-6))
    assert rel_err < tol, f"{name}: relative error {rel_err:.3e} >= {tol}"
    return rel_err


if __name__ == "__main__":
    # 1) Lane-aligned half (D=128): truncation folded into the BlockSpec,
    #    lane-dense (K, D) output, f32 compute.
    _run_case("f32_lane_aligned", feature_size=256, max_frames=8,
              cluster_size=16, batch=4, compute_dtype=jnp.float32, tol=2e-2)

    # 2) Same shapes with bf16 matmul inputs (f32 accumulation / softmax).
    _run_case("bf16_matmuls", feature_size=256, max_frames=8,
              cluster_size=16, batch=4, compute_dtype=jnp.bfloat16, tol=1e-1)

    # 3) Non-lane-aligned half (D=32): exercises the wrapper-slice fallback.
    _run_case("f32_fallback_slice", feature_size=64, max_frames=8,
              cluster_size=16, batch=2, compute_dtype=jnp.float32, tol=2e-2)

    # TODO(synk): training-time random half selection (torch.bernoulli) and the
    # optional BatchNorm1d (add_bn=True) are not part of this inference path.
    print("KERNEL_OK")
</pallas_src>

<mosaic_0001>
module attributes {stable_mosaic.version = 11 : i64} {
  func.func @_netvlad_kernel(%arg0: i32, %arg1: memref<4x8x128xf32, #tpu.memory_space<vmem>>, %arg2: memref<128x16xf32, #tpu.memory_space<vmem>>, %arg3: memref<1x16xf32, #tpu.memory_space<vmem>>, %arg4: memref<16x128xf32, #tpu.memory_space<vmem>>, %arg5: memref<4x16x128xf32, #tpu.memory_space<vmem>>) attributes {dimension_semantics = [#tpu.dimension_semantics<parallel>], iteration_bounds = array<i64: 1>, scalar_prefetch = 0 : i64, scratch_operands = 0 : i64, tpu.core_type = #tpu.core_type<tc>, window_params = [{transform_indices = @transform_0, window_bounds = array<i64: 4, 8, 128>}, {pipeline_mode = #tpu.pipeline_mode<synchronous>, transform_indices = @transform_1, window_bounds = array<i64: 128, 16>}, {pipeline_mode = #tpu.pipeline_mode<synchronous>, transform_indices = @transform_2, window_bounds = array<i64: 1, 16>}, {pipeline_mode = #tpu.pipeline_mode<synchronous>, transform_indices = @transform_3, window_bounds = array<i64: 16, 128>}, {transform_indices = @transform_4, window_bounds = array<i64: 4, 16, 128>}]} {
    %c0 = arith.constant 0 : index
    %c0_0 = arith.constant 0 : index
    %c0_1 = arith.constant 0 : index
    %0 = vector.load %arg1[%c0, %c0_0, %c0_1] : memref<4x8x128xf32, #tpu.memory_space<vmem>>, vector<4x8x128xf32>
    %1 = vector.shape_cast %0 : vector<4x8x128xf32> to vector<32x128xf32>
    %c0_2 = arith.constant 0 : index
    %c0_3 = arith.constant 0 : index
    %2 = vector.load %arg2[%c0_2, %c0_3] : memref<128x16xf32, #tpu.memory_space<vmem>>, vector<128x16xf32>
    %cst = arith.constant dense<0.000000e+00> : vector<32x16xf32>
    %3 = tpu.matmul %1, %2, %cst {dimension_numbers = #tpu.dot_dimension_numbers<[1], [0], [0], [1], [0, 0, 1, 1], [], []>} : vector<32x128xf32>, vector<128x16xf32>, vector<32x16xf32> -> vector<32x16xf32>
    %c0_4 = arith.constant 0 : index
    %c0_5 = arith.constant 0 : index
    %4 = vector.load %arg3[%c0_4, %c0_5] : memref<1x16xf32, #tpu.memory_space<vmem>>, vector<1x16xf32>
    %5 = vector.broadcast %4 : vector<1x16xf32> to vector<32x16xf32>
    %6 = arith.addf %3, %5 : vector<32x16xf32>
    %cst_6 = arith.constant dense<0xFF800000> : vector<32xf32>
    %7 = vector.multi_reduction <maximumf>, %6, %cst_6 [1] : vector<32x16xf32> to vector<32xf32>
    %8 = vector.shape_cast %7 : vector<32xf32> to vector<32x1xf32>
    %9 = vector.broadcast %8 : vector<32x1xf32> to vector<32x16xf32>
    %10 = arith.subf %6, %9 : vector<32x16xf32>
    %11 = math.exp %10 : vector<32x16xf32>
    %cst_7 = arith.constant dense<0.000000e+00> : vector<32xf32>
    %12 = vector.multi_reduction <add>, %11, %cst_7 [1] : vector<32x16xf32> to vector<32xf32>
    %13 = vector.shape_cast %12 : vector<32xf32> to vector<32x1xf32>
    %14 = tpu.reciprocal %13 {approx = true} : vector<32x1xf32> -> vector<32x1xf32>
    %15 = vector.broadcast %14 : vector<32x1xf32> to vector<32x16xf32>
    %16 = arith.mulf %11, %15 : vector<32x16xf32>
    %17 = vector.shape_cast %16 : vector<32x16xf32> to vector<4x8x16xf32>
    %cst_8 = arith.constant dense<0.000000e+00> : vector<4x16xf32>
    %18 = vector.multi_reduction <add>, %17, %cst_8 [1] : vector<4x8x16xf32> to vector<4x16xf32>
    %19 = vector.shape_cast %18 : vector<4x16xf32> to vector<4x16x1xf32>
    %c0_9 = arith.constant 0 : index
    %c0_10 = arith.constant 0 : index
    %20 = vector.load %arg4[%c0_9, %c0_10] : memref<16x128xf32, #tpu.memory_space<vmem>>, vector<16x128xf32>
    %21 = vector.shape_cast %20 : vector<16x128xf32> to vector<1x16x128xf32>
    %22 = vector.broadcast %19 : vector<4x16x1xf32> to vector<4x16x128xf32>
    %23 = vector.broadcast %21 : vector<1x16x128xf32> to vector<4x16x128xf32>
    %24 = arith.mulf %22, %23 : vector<4x16x128xf32>
    "tpu.trace_start"() <{level = 10 : i32, message = "bmk,bmd->bkd"}> : () -> ()
    %cst_11 = arith.constant dense<0.000000e+00> : vector<4x16x128xf32>
    %25 = tpu.matmul %17, %0, %cst_11 {dimension_numbers = #tpu.dot_dimension_numbers<[1], [1], [2], [2], [0, 0, 0, 2, 1, 2], [0], [0]>} : vector<4x8x16xf32>, vector<4x8x128xf32>, vector<4x16x128xf32> -> vector<4x16x128xf32>
    "tpu.trace_stop"() : () -> ()
    %26 = arith.subf %25, %24 : vector<4x16x128xf32>
    %c0_12 = arith.constant 0 : index
    %c0_13 = arith.constant 0 : index
    %c0_14 = arith.constant 0 : index
    %27 = vector.load %arg5[%c0_12, %c0_13, %c0_14] : memref<4x16x128xf32, #tpu.memory_space<vmem>>, vector<4x16x128xf32>
    tpu.vector_store %arg5[%c0_12, %c0_13, %c0_14], %26 {strides = array<i32>} : memref<4x16x128xf32, #tpu.memory_space<vmem>>, vector<4x16x128xf32>,
    return
  }
  func.func @transform_0(%arg0: i32) -> (i32, i32, i32) {
    %c0_i32 = arith.constant 0 : i32
    %c0_i32_0 = arith.constant 0 : i32
    %c0_i32_1 = arith.constant 0 : i32
    return %arg0, %c0_i32, %c0_i32_0 : i32, i32, i32
  }
  func.func @transform_1(%arg0: i32) -> (i32, i32) {
    %c0_i32 = arith.constant 0 : i32
    %c0_i32_0 = arith.constant 0 : i32
    %c0_i32_1 = arith.constant 0 : i32
    return %c0_i32, %c0_i32_0 : i32, i32
  }
  func.func @transform_2(%arg0: i32) -> (i32, i32) {
    %c0_i32 = arith.constant 0 : i32
    %c0_i32_0 = arith.constant 0 : i32
    %c0_i32_1 = arith.constant 0 : i32
    return %c0_i32, %c0_i32_0 : i32, i32
  }
  func.func @transform_3(%arg0: i32) -> (i32, i32) {
    %c0_i32 = arith.constant 0 : i32
    %c0_i32_0 = arith.constant 0 : i32
    %c0_i32_1 = arith.constant 0 : i32
    return %c0_i32, %c0_i32_0 : i32, i32
  }
  func.func @transform_4(%arg0: i32) -> (i32, i32, i32) {
    %c0_i32 = arith.constant 0 : i32
    %c0_i32_0 = arith.constant 0 : i32
    %c0_i32_1 = arith.constant 0 : i32
    return %arg0, %c0_i32, %c0_i32_0 : i32, i32, i32
  }
}

</mosaic_0001>

<bundles_post_ra>
// kernel: tpu_custom_call.1
= control target key start
LH: loop header
LB: loop body
LE: loop exit
PB: predicated region body
PF: predicated region fallthrough
CT: control target
= control target key end

     0   :  { %s1095_s0 = inlined_call_operand.vmem [shape: f32[4,8,256], index: 0, kind: input, shape index: {}]   ;;  %s1096_s1 = inlined_call_operand.vmem [shape: f32[128,16], index: 1, kind: input, shape index: {}]   ;;  %s1097_s2 = inlined_call_operand.vmem [shape: f32[1,16], index: 2, kind: input, shape index: {}]   ;;  %s1098_s3 = inlined_call_operand.vmem [shape: f32[16,128], index: 3, kind: input, shape index: {}]   ;;  %s1099_s4 = inlined_call_operand.hbm [shape: f32[4,16,128], index: 4, kind: output, shape index: {}]  }
   0x1   :  { %v68_v0 = vld [vmem:[%s1096_s1] sm:$0xff]  ;;  %v69_v1 = vld [vmem:[%s1096_s1 + $0x8] sm:$0xff]  ;;  %v70_v2 = vld [vmem:[%s1096_s1 + $0x10] sm:$0xff] }
   0x2   :  { %v875_v3 = vpack.c.bf16 %v69_v1, %v68_v0  ;;  %v71_v4 = vld [vmem:[%s1096_s1 + $0x18] sm:$0xff]  ;;  %v72_v6 = vld [vmem:[%s1096_s1 + $0x20] sm:$0xff]  ;;  %v73_v7 = vld [vmem:[%s1096_s1 + $0x28] sm:$0xff] }
   0x3   :  { %v879_v5 = vpack.c.bf16 %v71_v4, %v70_v2  ;;  %v883_v8 = vpack.c.bf16 %v73_v7, %v72_v6  ;;  %v45_v9 = vld [vmem:[%s1095_s0] sm:$0xff]  ;;  %v74_v10 = vld [vmem:[%s1096_s1 + $0x30] sm:$0xff]  ;;  %v75_v11 = vld [vmem:[%s1096_s1 + $0x38] sm:$0xff] }
   0x4   :  { %876 = vmatprep.subr.bf16.mxu0 %v875_v3  ;;  %849 = vmatprep.mubr.f32.mxu0 %v45_v9 }
   0x5   :  { %878 = vmatpush3.bf16.msra.mxu0 %v875_v3  ;;  %855 = vmatprep.subr.mxu1 %v45_v9 }
   0x6   :  { %880 = vmatprep.subr.bf16.mxu0 %v879_v5 }
   0x7   :  { %9 = vsyncpa [#allocation4], 0  ;;  %v1009_v12 = vld [vmem:[%s1095_s0 + $0x10] sm:$0xff]  ;;  %856 = vmatpush3.msra.mxu1 %v45_v9  ;;  %v887_v13 = vpack.c.bf16 %v75_v11, %v74_v10  ;;  %v76_v14 = vld [vmem:[%s1096_s1 + $0x40] sm:$0xff]  ;;  %vm176_vm0 = vcmask 130048   ;;  %vm319_vm1 = vcmask 64512  }
   0x8   :  { %860 = vmatprep.subr.mxu1 %v1009_v12  ;;  %v77_v15 = vld [vmem:[%s1096_s1 + $0x48] sm:$0xff]  ;;  %v78_v17 = vld [vmem:[%s1096_s1 + $0x50] sm:$0xff]  ;;  %v79_v18 = vld [vmem:[%s1096_s1 + $0x58] sm:$0xff] }
   0x9   :  { %882 = vmatpush3.bf16.msra.mxu0 %v879_v5  ;;  %v891_v16 = vpack.c.bf16 %v77_v15, %v76_v14  ;;  %v895_v19 = vpack.c.bf16 %v79_v18, %v78_v17  ;;  %v80_v20 = vld [vmem:[%s1096_s1 + $0x60] sm:$0xff]  ;;  %v81_v21 = vld [vmem:[%s1096_s1 + $0x68] sm:$0xff]  ;;  %v82_v23 = vld [vmem:[%s1096_s1 + $0x70] sm:$0xff] }
   0xa   :  { %884 = vmatprep.subr.bf16.mxu0 %v883_v8  ;;  %v899_v22 = vpack.c.bf16 %v81_v21, %v80_v20  ;;  %v83_v24 = vld [vmem:[%s1096_s1 + $0x78] sm:$0xff]  ;;  %v1039_v26 = vld [vmem:[%s1095_s0 + $0x20] sm:$0xff]  ;;  %v1046_v27 = vld [vmem:[%s1095_s0 + $0x30] sm:$0xff] }
   0xb   :  { %v903_v25 = vpack.c.bf16 %v83_v24, %v82_v23  ;;  %v776_v28 = vld [vmem:[%s1097_s2] ss:$0 sm:$0xff] }
   0xd   :  { %886 = vmatpush3.bf16.msra.mxu0 %v883_v8 }
   0xe   :  { %888 = vmatprep.subr.bf16.mxu0 %v887_v13 }
  0x11   :  { %890 = vmatpush3.bf16.msra.mxu0 %v887_v13 }
  0x12   :  { %892 = vmatprep.subr.bf16.mxu0 %v891_v16 }
  0x15   :  { %894 = vmatpush3.bf16.msra.mxu0 %v891_v16 }
  0x16   :  { %896 = vmatprep.subr.bf16.mxu0 %v895_v19 }
  0x19   :  { %898 = vmatpush3.bf16.msra.mxu0 %v895_v19 }
  0x1a   :  { %900 = vmatprep.subr.bf16.mxu0 %v899_v22 }
  0x1d   :  { %902 = vmatpush3.bf16.msra.mxu0 %v899_v22 }
  0x1e   :  { %904 = vmatprep.subr.bf16.mxu0 %v903_v25 }
  0x21   :  { %906 = vmatpush3.bf16.msra.mxu0 %v903_v25 }
  0x24   :  { %850 = vmatmul.mubr.f32.vlgmr.msra.gmra.mrb[0].mxu0 %v1009_v12 }
  0x25   :  { %852 = vmatprep.mubr.f32.mxu0 %v1039_v26 }
  0x28   :  { %853 = vmatmul.mubr.f32.gmra.mrb[2].mxu0 %v1046_v27 }
  0xf7   :  { %v851_v29 = vpop.f32.mrb[0].mxu0 }
  0xf8   :  { %v157_v30 = vpop.f32.mrb[1].mxu0  ;;  %v163_v32 = vadd.f32 %v851_v29, %v776_v28 }
  0xf9   :  { %v158_v31 = vadd.f32 %v776_v28, %v157_v30 }
  0xfa   :  { %v180_v39 = vsel %vm176_vm0, %v163_v32, -inf }
  0xfb   :  { %v854_v33 = vpop.f32.mrb[2].mxu0  ;;  %v177_v34 = vsel %vm176_vm0, %v158_v31, -inf }
  0xfc   :  { %v167_v35 = vpop.f32.mrb[3].mxu0  ;;  %178 = vmax.xlane.f32.xlu0 %v177_v34  ;;  %v173_v36 = vadd.f32 %v854_v33, %v776_v28 }
  0xfd   :  { %v168_v37 = vadd.f32 %v776_v28, %v167_v35 }
  0xfe   :  { %v186_v40 = vsel %vm176_vm0, %v173_v36, -inf }
  0xff   :  { %v183_v38 = vsel %vm176_vm0, %v168_v37, -inf }
 0x100   :  { %184 = vmax.xlane.f32.xlu1 %v183_v38  ;;  %181 = vmax.xlane.f32.xlu0 %v180_v39 }
 0x104   :  { %187 = vmax.xlane.f32.xlu1 %v186_v40 }
 0x189   :  { %v179_v41 = vpop.xlane.xlu0 %178 }
 0x18a   :  { %v189_v42 = vsub.f32 %v158_v31, %v179_v41 }
 0x18c   :  { %v193_v43 = vmul.f32 1.442695, %v189_v42 }
 0x18d   :  { %v185_v44 = vpop.xlane.xlu1 %184  ;;  %v182_v45 = vpop.xlane.xlu0 %181 }
 0x18e   :  { %911 = vpow2.f32 %v193_v43  ;;  %v191_v46 = vsub.f32 %v168_v37, %v185_v44  ;;  %v190_v47 = vsub.f32 %v163_v32, %v182_v45 }
 0x190   :  { %v197_v48 = vmul.f32 1.442695, %v191_v46  ;;  %v195_v49 = vmul.f32 1.442695, %v190_v47 }
 0x191   :  { %v188_v50 = vpop.xlane.xlu1 %187 }
 0x192   :  { %913 = vpow2.f32 %v197_v48  ;;  %v192_v51 = vsub.f32 %v173_v36, %v188_v50 }
 0x193   :  { %915 = vpow2.f32 %v195_v49 }
 0x194   :  { %v199_v52 = vmul.f32 1.442695, %v192_v51  ;;  %v277_v51 = vld [vmem:[%s1098_s3] sm:$0xff] }
 0x196   :  { %917 = vpow2.f32 %v199_v52 }
 0x198   :  { %v912_v53 = vpop.eup %911 }
 0x199   :  { %v201_v54 = vsel %vm176_vm0, %v912_v53, 0.0 }
 0x19a   :  { %202 = vadd.xlane.f32.xlu0 %v201_v54 }
 0x19c   :  { %v914_v55 = vpop.eup %913 }
 0x19d   :  { %v916_v56 = vpop.eup %915  ;;  %v207_v57 = vsel %vm176_vm0, %v914_v55, 0.0 }
 0x19e   :  { %208 = vadd.xlane.f32.xlu0 %v207_v57  ;;  %v204_v58 = vsel %vm176_vm0, %v916_v56, 0.0 }
 0x19f   :  { %205 = vadd.xlane.f32.xlu1 %v204_v58 }
 0x1a0   :  { %v918_v59 = vpop.eup %917 }
 0x1a1   :  { %v210_v60 = vsel %vm176_vm0, %v918_v59, 0.0 }
 0x1a3   :  { %211 = vadd.xlane.f32.xlu1 %v210_v60 }
 0x227   :  { %v203_v61 = vpop.xlane.xlu0 %202 }
 0x228   :  { %919 = vrcp.f32 %v203_v61 }
 0x22b   :  { %v209_v62 = vpop.xlane.xlu0 %208 }
 0x22c   :  { %v206_v63 = vpop.xlane.xlu1 %205  ;;  %921 = vrcp.f32 %v209_v62 }
 0x22d   :  { %923 = vrcp.f32 %v206_v63 }
 0x230   :  { %v212_v0 = vpop.xlane.xlu1 %211 }
 0x231   :  { %925 = vrcp.f32 %v212_v0 }
 0x232   :  { %v920_v1 = vpop.eup %919 }
 0x233   :  { %v217_v2 = vmul.f32 %v920_v1, %v912_v53 }
 0x235   :  { %287 = vxpose.xlu0.b32.start.end [1/1] (short) (narrow) %v217_v2, 16  ;;  %v221_v13 = vsel %vm176_vm0, %v217_v2, 0.0 }
 0x236   :  { %v922_v3 = vpop.eup %921  ;;  %v222_v14 = vrot.slane %v221_v13, 4 }
 0x237   :  { %v924_v4 = vpop.eup %923  ;;  %v219_v5 = vmul.f32 %v922_v3, %v914_v55 }
 0x238   :  { %v218_v6 = vmul.f32 %v924_v4, %v916_v56  ;;  %v223_v17 = vadd.f32 %v222_v14, %v221_v13 }
 0x239   :  { %v235_v16 = vsel %vm176_vm0, %v219_v5, 0.0 }
 0x23a   :  { %401 = vxpose.xlu1.b32.start.end [1/1] (short) (narrow) %v218_v6, 16  ;;  %514 = vxpose.xlu0.b32.start.end [1/1] (short) (narrow) %v219_v5, 16  ;;  %v228_v9 = vsel %vm176_vm0, %v218_v6, 0.0  ;;  %v236_v18 = vrot.slane %v235_v16, 4  ;;  %v224_v22 = vrot.slane %v223_v17, 2 }
 0x23b   :  { %v926_v7 = vpop.eup %925  ;;  %v229_v10 = vrot.slane %v228_v9, 4 }
 0x23c   :  { %v220_v8 = vmul.f32 %v926_v7, %v918_v59  ;;  %v237_v20 = vadd.f32 %v236_v18, %v235_v16  ;;  %v225_v28 = vadd.f32 %v224_v22, %v223_v17 }
 0x23d   :  { %v230_v11 = vadd.f32 %v229_v10, %v228_v9 }
 0x23e   :  { %v242_v23 = vsel %vm176_vm0, %v220_v8, 0.0  ;;  %v238_v29 = vrot.slane %v237_v20, 2  ;;  %v226_v31 = vrot.slane %v225_v28, 1 }
 0x23f   :  { %627 = vxpose.xlu0.b32.start.end [1/1] (short) (narrow) %v220_v8, 16  ;;  %v231_v15 = vrot.slane %v230_v11, 2  ;;  %v243_v24 = vrot.slane %v242_v23, 4 }
 0x240   :  { %v239_v32 = vadd.f32 %v238_v29, %v237_v20  ;;  %v227_v33 = vadd.f32 %v226_v31, %v225_v28 }
 0x241   :  { %v232_v19 = vadd.f32 %v231_v15, %v230_v11  ;;  %v244_v30 = vadd.f32 %v243_v24, %v242_v23 }
 0x242   :  { %v240_v34 = vrot.slane %v239_v32, 1 }
 0x243   :  { %v233_v21 = vrot.slane %v232_v19, 1  ;;  %v245_v35 = vrot.slane %v244_v30, 2 }
 0x244   :  { %v241_v36 = vadd.f32 %v240_v34, %v239_v32 }
 0x245   :  { %v234_v25 = vadd.f32 %v233_v21, %v232_v19  ;;  %v246_v37 = vadd.f32 %v245_v35, %v244_v30 }
 0x247   :  { %v247_v38 = vrot.slane %v246_v37, 1 }
 0x249   :  { %v248_v39 = vadd.f32 %v247_v38, %v246_v37 }
 0x25c   :  { %257 = vbcast.lane.b32.xlu1 %v234_v25, 256 }
 0x260   :  { %261 = vbcast.lane.b32.xlu1 %v234_v25, 264 }
 0x264   :  { %250 = vbcast.lane.b32.xlu1 %v227_v33, 256 }
 0x268   :  { %264 = vbcast.lane.b32.xlu1 %v241_v36, 256 }
 0x26c   :  { %268 = vbcast.lane.b32.xlu1 %v241_v36, 264  ;;  %254 = vbcast.lane.b32.xlu0 %v227_v33, 264 }
 0x270   :  { %275 = vbcast.lane.b32.xlu1 %v248_v39, 264  ;;  %271 = vbcast.lane.b32.xlu0 %v248_v39, 256 }
 0x2b5   :  { %v303_v40 = vpop.trf.xlu0 }
 0x2b6   :  { %857 = vmatprep.mubr.msk.f32.mxu1 %vm319_vm1, %v303_v40 }
 0x2b9   :  { %v304_v41 = vpop.trf.xlu0 }
 0x2ba   :  { %v417_v42 = vpop.trf.xlu1  ;;  %858 = vmatmul.mubr.msk.f32.vlgmr.msra.gmra.mrb[0].mxu1 %vm319_vm1, %v304_v41 }
 0x2bb   :  { %861 = vmatpush3.msra.mxu1 %v1009_v12  ;;  %862 = vmatprep.mubr.msk.f32.mxu1 %vm319_vm1, %v417_v42 }
 0x2bc   :  { %865 = vmatprep.subr.mxu1 %v1039_v26 }
 0x2bd   :  { %v530_v43 = vpop.trf.xlu0 }
 0x2be   :  { %v418_v44 = vpop.trf.xlu1 }
 0x2bf   :  { %863 = vmatmul.mubr.msk.f32.vlgmr.msra.gmra.mrb[2].mxu1 %vm319_vm1, %v418_v44 }
 0x2c0   :  { %867 = vmatprep.mubr.msk.f32.mxu1 %vm319_vm1, %v530_v43  ;;  %866 = vmatpush3.msra.mxu1 %v1039_v26  ;;  %v278_v26 = vld [vmem:[%s1098_s3 + $0x8] sm:$0xff]  ;;  %s951_s3 = smov [#allocation3]  }
 0x2c1   :  { %v531_v45 = vpop.trf.xlu0  ;;  %870 = vmatprep.subr.mxu1 %v1046_v27  ;;  %s761_s6 = sshll.u32 %s951_s3, 4  ;;  %s762_s6 = int_to_ptr.vmem [resolvable:$true] %s761_s6 }
 0x2c2   :  { %s927_s7 = scalar_lea.vmem %s762_s6, 1024  ;;  %p932_p1 = scmp.lt.s32.totalorder %s762_s6, %s762_s6 }
 0x2c3   :  { %868 = vmatmul.mubr.msk.f32.vlgmr.msra.gmra.mrb[4].mxu1 %vm319_vm1, %v531_v45  ;;  %p928_p0 = scmp.ne.s32.totalorder %s762_s6, %s927_s7  ;;  %p933_p2 = scmp.lt.s32.totalorder %s927_s7, %s927_s7 }
 0x2c4   :  { %871 = vmatpush3.msra.mxu1 %v1046_v27 }
 0x2c5   :  { %v643_v12 = vpop.trf.xlu0  ;;  %p934_p3 = por %p933_p2, %p932_p1 }
 0x2c6   :  { %872 = vmatprep.mubr.msk.f32.mxu1 %vm319_vm1, %v643_v12 }
 0x2c7   :  { %p935_p4 = pnand %p934_p3, %p928_p0 }
 0x2c9   :  { %v644_v46 = vpop.trf.xlu0 }
 0x2ca   :  { %873 = vmatmul.mubr.msk.f32.vlgmr.msra.gmra.mrb[6].mxu1 %vm319_vm1, %v644_v46 }
 0x2ce   :  { %v258_v47 = vpop.permute.xlu1 %257 }
 0x2cf   :  { %v281_v59 = vmul.f32 %v277_v51, %v258_v47 }
 0x2d2   :  { %v262_v48 = vpop.permute.xlu1 %261 }
 0x2d3   :  { %v282_v58 = vmul.f32 %v278_v26, %v262_v48 }
 0x2d6   :  { %v251_v49 = vpop.permute.xlu1 %250 }
 0x2d7   :  { %v279_v53 = vmul.f32 %v277_v51, %v251_v49 }
 0x2da   :  { %v265_v52 = vpop.permute.xlu1 %264 }
 0x2db   :  { %v283_v2 = vmul.f32 %v277_v51, %v265_v52 }
 0x2de   :  { %v255_v50 = vpop.permute.xlu0 %254  ;;  %v269_v60 = vpop.permute.xlu1 %268 }
 0x2df   :  { %v280_v27 = vmul.f32 %v278_v26, %v255_v50  ;;  %v284_v1 = vmul.f32 %v278_v26, %v269_v60 }
 0x2e2   :  { %v276_v7 = vpop.permute.xlu1 %275  ;;  %v272_v8 = vpop.permute.xlu0 %271 }
 0x2e3   :  { %v286_v9 = vmul.f32 %v278_v26, %v276_v7  ;;  %v285_v10 = vmul.f32 %v277_v51, %v272_v8 }
 0x38d   :  { %v859_v54 = vpop.f32.mrb[0].mxu1 }
 0x38e   :  { %v741_v55 = vsub.f32 %v859_v54, %v280_v27  ;;  %v392_v56 = vpop.f32.mrb[1].mxu1 }
 0x38f   :  { %v740_v57 = vsub.f32 %v392_v56, %v279_v53 }
 0x390   :  { %749 = vst [vmem:[#allocation3 + $0x8] sm:$0xff] %v741_v55 }
 0x391   :  { %748 = vst [vmem:[#allocation3] sm:$0xff] %v740_v57 }
 0x392   :  { %v864_v61 = vpop.f32.mrb[2].mxu1 }
 0x393   :  { %v743_v62 = vsub.f32 %v864_v61, %v282_v58  ;;  %v505_v63 = vpop.f32.mrb[3].mxu1 }
 0x394   :  { %v742_v0 = vsub.f32 %v505_v63, %v281_v59 }
 0x395   :  { %751 = vst [vmem:[#allocation3 + $0x18] sm:$0xff] %v743_v62 }
 0x396   :  { %750 = vst [vmem:[#allocation3 + $0x10] sm:$0xff] %v742_v0  ;;  %v869_v3 = vpop.f32.mrb[4].mxu1 }
 0x397   :  { %v745_v4 = vsub.f32 %v869_v3, %v284_v1  ;;  %v618_v5 = vpop.f32.mrb[5].mxu1 }
 0x398   :  { %v744_v6 = vsub.f32 %v618_v5, %v283_v2 }
 0x399   :  { %753 = vst [vmem:[#allocation3 + $0x28] sm:$0xff] %v745_v4 }
 0x39a   :  { %752 = vst [vmem:[#allocation3 + $0x20] sm:$0xff] %v744_v6 }
 0x39d   :  { %v874_v11 = vpop.f32.mrb[6].mxu1 }
 0x39e   :  { %v747_v13 = vsub.f32 %v874_v11, %v286_v9  ;;  %v731_v14 = vpop.f32.mrb[7].mxu1 }
 0x39f   :  { %v746_v15 = vsub.f32 %v731_v14, %v285_v10 }
 0x3a0   :  { %755 = vst [vmem:[#allocation3 + $0x38] sm:$0xff] %v747_v13 }
 0x3a1   :  { %754 = vst [vmem:[#allocation3 + $0x30] sm:$0xff] %v746_v15 }
 0x3a2   :  { %938 = shalt.err (!%p935_p4)
}
 0x3a3   :  { %s939_s10 = scalar_lea.hbm %s1099_s4, 1024 }
 0x3a4   :  { %p940_p5 = scmp.ne.s32.totalorder %s1099_s4, %s939_s10  ;;  %p943_p6 = scmp.lt.u32.totalorder %s939_s10, %s1099_s4 }
 0x3a6   :  { %p945_p7 = pnand %p943_p6, %p940_p5 }
 0x3a8   :  { %948 = shalt.err (!%p945_p7)
}
 0x3a9   :  { %s952_s15 = smov 128   ;;  %s953_s16 = smov 8  }
 0x3aa   :  { %767 = dma.vmem_to_hbm [thread:$0]  %s762_s6, 1024, %s1099_s4, [#allocation4], %s952_s15, %s952_s15, %s953_s16  }
 0x3ab   :  { %949 = dma.done.wait [#allocation4], 1024  }
 0x3ac   :  { %950 = vsyncadd [#allocation4], 4294966272 }
 0x3ad   :  { %771 = vsyncpa [#allocation4], 1 }

</bundles_post_ra>
